<compile_context>
chip_gen: v7x
topology: tpu7x:2x2x1
jax: 0.10.0
libtpu: 0.0.40
codegen_flags: <defaults>
</compile_context>

<pallas_src>
import functools

import jax
import jax.numpy as jnp
from jax.experimental import pallas as pl
from jax.experimental.pallas import tpu as pltpu

BN_EPS = 1e-5


# ---------------------------------------------------------------------------
# Pallas kernels
# ---------------------------------------------------------------------------
def conv_stats_kernel(p_ref, w_ref, stats_ref):
    """Pass 1: conv matmul (bf16 in, f32 acc); emit per-tile per-channel [sum, sum_sq]."""
    y = jnp.dot(p_ref[0], w_ref[...], preferred_element_type=jnp.float32)  # (tm, cout_p)
    # Zero-padded rows contribute 0 to both partials, so padding never biases stats.
    s = jnp.sum(y, axis=0, keepdims=True)          # (1, cout_p)
    q = jnp.sum(y * y, axis=0, keepdims=True)      # (1, cout_p)
    stats_ref[...] = jnp.concatenate([s, q], axis=0).reshape(stats_ref.shape)


def conv_bn_relu_kernel(p_ref, w_ref, scale_ref, shift_ref, o_ref, *, cout):
    """Pass 2: recompute conv matmul, fused BN (scale/shift) + ReLU, channel-major store."""
    y = jnp.dot(p_ref[0], w_ref[...], preferred_element_type=jnp.float32)  # (tm, cout_p)
    y = jnp.maximum(y * scale_ref[...] + shift_ref[...], 0.0)
    # Transpose on the XLU (overlaps MXU/VPU); keep only the true channels so the
    # (1, cout, tm) store is lane-dense (tm % 128 == 0) with no padded-channel bytes.
    o_ref[...] = jnp.transpose(y)[:cout].reshape(o_ref.shape).astype(o_ref.dtype)


# ---------------------------------------------------------------------------
# Wrapper glue
# ---------------------------------------------------------------------------
def _round_up(x, m):
    return (x + m - 1) // m * m


def _im2col(x, kernel_size, stride, padding):
    """x: (N, Cin, H, W) -> patches (N, OH*OW, Cin*K*K), plus (OH, OW)."""
    n, cin, h, w = x.shape
    k, s, p = kernel_size, stride, padding
    oh = (h + 2 * p - k) // s + 1
    ow = (w + 2 * p - k) // s + 1
    xp = jnp.pad(x, ((0, 0), (0, 0), (p, p), (p, p)))
    taps = []
    for kh in range(k):
        for kw in range(k):
            taps.append(xp[:, :, kh:kh + oh * s:s, kw:kw + ow * s:s])   # (N,Cin,OH,OW)
    pat = jnp.stack(taps, axis=-1)                                      # (N,Cin,OH,OW,K*K)
    pat = jnp.transpose(pat, (0, 2, 3, 1, 4))                           # (N,OH,OW,Cin,K*K)
    return pat.reshape(n, oh * ow, cin * k * k), oh, ow


@functools.partial(jax.jit,
                   static_argnames=("kernel_size", "stride", "padding", "tile_rows"))
def conv_relu_forward(x, weight, bias, gamma, beta, *,
                      kernel_size, stride, padding, tile_rows=512):
    """x: (N, Cin, H, W) NCHW. Returns (N, Cout, OH, OW). Matches Conv2d+BN(train)+ReLU."""
    del bias  # Per-channel conv bias is exactly cancelled by train-mode BatchNorm.
    n = x.shape[0]
    cout = weight.shape[0]

    # im2col in bf16 (MXU-native operand dtype; halves patch HBM traffic vs f32).
    patches, oh, ow = _im2col(x.astype(jnp.bfloat16), kernel_size, stride, padding)
    ohow = oh * ow
    kdim = patches.shape[-1]

    # MXU / vreg friendly padding: lane dims to 128, row tile a multiple of 128.
    kdim_p = _round_up(kdim, 128)
    cout_p = _round_up(cout, 128)
    tm = min(_round_up(tile_rows, 128), _round_up(ohow, 128))
    ohow_p = _round_up(ohow, tm)
    nrt = ohow_p // tm                 # row tiles per image; total grid tiles = n * nrt

    patches_p = jnp.pad(patches, ((0, 0), (0, ohow_p - ohow), (0, kdim_p - kdim)))
    w_mat = weight.reshape(cout, -1).T.astype(jnp.bfloat16)            # (kdim, cout)
    w_p = jnp.pad(w_mat, ((0, kdim_p - kdim), (0, cout_p - cout)))

    # Explicit scoped-VMEM budget (v5e scoped default is 16 MiB; v7x physical is 64 MiB).
    tile_bytes = (2 * tm * kdim_p * 2                    # double-buffered bf16 patch tile
                  + 2 * kdim_p * cout_p * 2              # resident bf16 weight
                  + 2 * max(cout * tm, 2 * cout_p) * 4   # output / stats tiles
                  + 4 * cout_p * 4)                      # scale / shift
    vmem_limit = int(min(64 * 1024 * 1024, max(4 * tile_bytes, 16 * 1024 * 1024)))
    cparams = pltpu.CompilerParams(
        dimension_semantics=("parallel", "parallel"),
        vmem_limit_bytes=vmem_limit)

    # ---- pass 1: per-tile per-channel [sum, sum_sq]; no conv output written to HBM ---
    stats = pl.pallas_call(
        conv_stats_kernel,
        out_shape=jax.ShapeDtypeStruct((n, nrt, 2, cout_p), jnp.float32),
        grid=(n, nrt),
        in_specs=[
            pl.BlockSpec((1, tm, kdim_p), lambda ni, ri: (ni, ri, 0)),
            pl.BlockSpec((kdim_p, cout_p), lambda ni, ri: (0, 0)),
        ],
        out_specs=pl.BlockSpec((1, 1, 2, cout_p), lambda ni, ri: (ni, ri, 0, 0)),
        compiler_params=cparams,
    )(patches_p, w_p)

    # ---- tiny per-channel combine; fold BN into one scale/shift (hoisted) -----------
    total = jnp.sum(stats[:, :, 0, :], axis=(0, 1))                    # (cout_p,)
    total_sq = jnp.sum(stats[:, :, 1, :], axis=(0, 1))
    count = n * ohow                                   # true count (padding added zeros)
    mean = total / count
    var = jnp.maximum(total_sq / count - mean * mean, 0.0)
    inv_std = jax.lax.rsqrt(var + BN_EPS)
    gamma_p = jnp.pad(gamma.astype(jnp.float32), (0, cout_p - cout))
    beta_p = jnp.pad(beta.astype(jnp.float32), (0, cout_p - cout))
    scale = (gamma_p * inv_std).reshape(1, cout_p)
    shift = (beta_p - mean * gamma_p * inv_std).reshape(1, cout_p)

    # ---- pass 2: recompute conv, fused BN + ReLU, channel-major lane-dense output ----
    out = pl.pallas_call(
        functools.partial(conv_bn_relu_kernel, cout=cout),
        out_shape=jax.ShapeDtypeStruct((n, cout, ohow_p), jnp.float32),
        grid=(n, nrt),
        in_specs=[
            pl.BlockSpec((1, tm, kdim_p), lambda ni, ri: (ni, ri, 0)),
            pl.BlockSpec((kdim_p, cout_p), lambda ni, ri: (0, 0)),
            pl.BlockSpec((1, cout_p), lambda ni, ri: (0, 0)),
            pl.BlockSpec((1, cout_p), lambda ni, ri: (0, 0)),
        ],
        out_specs=pl.BlockSpec((1, cout, tm), lambda ni, ri: (ni, 0, ri)),
        compiler_params=cparams,
    )(patches_p, w_p, scale, shift)

    # Output is already channel-major NCHW-flat: just drop row padding and reshape.
    return out[:, :, :ohow].reshape(n, cout, oh, ow)


# ---------------------------------------------------------------------------
# Pure-JAX reference (mirrors PyTorch Conv2d + BatchNorm2d(train) + ReLU)
# ---------------------------------------------------------------------------
def _reference(x, weight, bias, gamma, beta, *, stride, padding,
               conv_dtype=jnp.float32):
    y = jax.lax.conv_general_dilated(
        x.astype(conv_dtype), weight.astype(conv_dtype),
        window_strides=(stride, stride),
        padding=[(padding, padding), (padding, padding)],
        dimension_numbers=("NCHW", "OIHW", "NCHW"),
        preferred_element_type=jnp.float32)
    y = y + bias.reshape(1, -1, 1, 1).astype(jnp.float32)
    mean = jnp.mean(y, axis=(0, 2, 3), keepdims=True)
    var = jnp.mean((y - mean) ** 2, axis=(0, 2, 3), keepdims=True)
    y = gamma.reshape(1, -1, 1, 1) * (y - mean) * jax.lax.rsqrt(var + BN_EPS) \
        + beta.reshape(1, -1, 1, 1)
    return jnp.maximum(y, 0.0)


if __name__ == "__main__":
    # ConvReLU(in_channels=4, out_channels=8, kernel_size=3, stride=1, padding=1)
    N, CIN, COUT, H, W = 2, 4, 8, 16, 16
    K, S, P = 3, 1, 1

    key = jax.random.PRNGKey(0)
    kx, kw = jax.random.split(key)
    x = jax.random.normal(kx, (N, CIN, H, W), dtype=jnp.float32)

    # xavier_normal_ init for conv weight (gain=1), bias = 0 (as in xavier_init).
    fan_in, fan_out = CIN * K * K, COUT * K * K
    std = (2.0 / (fan_in + fan_out)) ** 0.5
    weight = std * jax.random.normal(kw, (COUT, CIN, K, K), dtype=jnp.float32)
    bias = jnp.zeros((COUT,), dtype=jnp.float32)
    # BatchNorm2d affine params (PyTorch defaults: gamma=1, beta=0).
    gamma = jnp.ones((COUT,), dtype=jnp.float32)
    beta = jnp.zeros((COUT,), dtype=jnp.float32)

    out = conv_relu_forward(x, weight, bias, gamma, beta,
                            kernel_size=K, stride=S, padding=P)
    out = jax.block_until_ready(out)
    assert out.shape == (N, COUT, H, W)

    # Tight check vs a reference whose conv operands are bf16 (same quantization as
    # the kernel's MXU inputs), all other math in f32.
    ref_bf16 = _reference(x, weight, bias, gamma, beta,
                          stride=S, padding=P, conv_dtype=jnp.bfloat16)
    assert jnp.allclose(out, ref_bf16, atol=2e-3, rtol=2e-3), \
        "mismatch vs bf16-conv reference"

    # Loose sanity check vs exact f32 module semantics (difference is only bf16
    # rounding of the MXU operands; outputs are BN-normalized, so O(1e-2)).
    ref_f32 = _reference(x, weight, bias, gamma, beta,
                         stride=S, padding=P, conv_dtype=jnp.float32)
    assert jnp.allclose(out, ref_f32, atol=5e-2, rtol=5e-2), \
        "mismatch vs f32 reference"

    print("KERNEL_OK")
</pallas_src>

<mosaic_0001>
module attributes {stable_mosaic.version = 11 : i64} {
  func.func @conv_stats_kernel(%arg0: i32, %arg1: i32, %arg2: memref<1x256x128xbf16, #tpu.memory_space<vmem>>, %arg3: memref<128x128xbf16, #tpu.memory_space<vmem>>, %arg4: memref<1x1x2x128xf32, #tpu.memory_space<vmem>>) attributes {dimension_semantics = [#tpu.dimension_semantics<parallel>, #tpu.dimension_semantics<parallel>], iteration_bounds = array<i64: 2, 1>, scalar_prefetch = 0 : i64, scratch_operands = 0 : i64, tpu.core_type = #tpu.core_type<tc>, window_params = [{transform_indices = @transform_0, window_bounds = array<i64: 1, 256, 128>}, {pipeline_mode = #tpu.pipeline_mode<synchronous>, transform_indices = @transform_1, window_bounds = array<i64: 128, 128>}, {transform_indices = @transform_2, window_bounds = array<i64: 1, 1, 2, 128>}]} {
    %c0 = arith.constant 0 : index
    %c0_0 = arith.constant 0 : index
    %c0_1 = arith.constant 0 : index
    %0 = vector.load %arg2[%c0, %c0_0, %c0_1] : memref<1x256x128xbf16, #tpu.memory_space<vmem>>, vector<1x256x128xbf16>
    %1 = vector.shape_cast %0 : vector<1x256x128xbf16> to vector<256x128xbf16>
    %c0_2 = arith.constant 0 : index
    %c0_3 = arith.constant 0 : index
    %2 = vector.load %arg3[%c0_2, %c0_3] : memref<128x128xbf16, #tpu.memory_space<vmem>>, vector<128x128xbf16>
    %cst = arith.constant dense<0.000000e+00> : vector<256x128xf32>
    %3 = tpu.matmul %1, %2, %cst {dimension_numbers = #tpu.dot_dimension_numbers<[1], [0], [0], [1], [0, 0, 1, 1], [], []>} : vector<256x128xbf16>, vector<128x128xbf16>, vector<256x128xf32> -> vector<256x128xf32>
    %cst_4 = arith.constant dense<0.000000e+00> : vector<128xf32>
    %4 = vector.multi_reduction <add>, %3, %cst_4 [0] : vector<256x128xf32> to vector<128xf32>
    %5 = vector.shape_cast %4 : vector<128xf32> to vector<1x128xf32>
    %6 = arith.mulf %3, %3 : vector<256x128xf32>
    %cst_5 = arith.constant dense<0.000000e+00> : vector<128xf32>
    %7 = vector.multi_reduction <add>, %6, %cst_5 [0] : vector<256x128xf32> to vector<128xf32>
    %8 = vector.shape_cast %7 : vector<128xf32> to vector<1x128xf32>
    %9 = tpu.concatenate %5, %8 in 0 : vector<1x128xf32>, vector<1x128xf32> -> vector<2x128xf32>
    %10 = vector.shape_cast %9 : vector<2x128xf32> to vector<1x1x2x128xf32>
    %c0_6 = arith.constant 0 : index
    %c0_7 = arith.constant 0 : index
    %c0_8 = arith.constant 0 : index
    %c0_9 = arith.constant 0 : index
    %11 = vector.load %arg4[%c0_6, %c0_7, %c0_8, %c0_9] : memref<1x1x2x128xf32, #tpu.memory_space<vmem>>, vector<1x1x2x128xf32>
    tpu.vector_store %arg4[%c0_6, %c0_7, %c0_8, %c0_9], %10 {strides = array<i32>} : memref<1x1x2x128xf32, #tpu.memory_space<vmem>>, vector<1x1x2x128xf32>,
    return
  }
  func.func @transform_0(%arg0: i32, %arg1: i32) -> (i32, i32, i32) {
    %c0_i32 = arith.constant 0 : i32
    %c0_i32_0 = arith.constant 0 : i32
    return %arg0, %arg1, %c0_i32 : i32, i32, i32
  }
  func.func @transform_1(%arg0: i32, %arg1: i32) -> (i32, i32) {
    %c0_i32 = arith.constant 0 : i32
    %c0_i32_0 = arith.constant 0 : i32
    %c0_i32_1 = arith.constant 0 : i32
    return %c0_i32, %c0_i32_0 : i32, i32
  }
  func.func @transform_2(%arg0: i32, %arg1: i32) -> (i32, i32, i32, i32) {
    %c0_i32 = arith.constant 0 : i32
    %c0_i32_0 = arith.constant 0 : i32
    %c0_i32_1 = arith.constant 0 : i32
    return %arg0, %arg1, %c0_i32, %c0_i32_0 : i32, i32, i32, i32
  }
}

module attributes {stable_mosaic.version = 11 : i64} {
  func.func @conv_bn_relu_kernel(%arg0: i32, %arg1: i32, %arg2: memref<1x256x128xbf16, #tpu.memory_space<vmem>>, %arg3: memref<128x128xbf16, #tpu.memory_space<vmem>>, %arg4: memref<1x128xf32, #tpu.memory_space<vmem>>, %arg5: memref<1x128xf32, #tpu.memory_space<vmem>>, %arg6: memref<1x8x256xf32, #tpu.memory_space<vmem>>) attributes {dimension_semantics = [#tpu.dimension_semantics<parallel>, #tpu.dimension_semantics<parallel>], iteration_bounds = array<i64: 2, 1>, scalar_prefetch = 0 : i64, scratch_operands = 0 : i64, tpu.core_type = #tpu.core_type<tc>, window_params = [{transform_indices = @transform_0, window_bounds = array<i64: 1, 256, 128>}, {pipeline_mode = #tpu.pipeline_mode<synchronous>, transform_indices = @transform_1, window_bounds = array<i64: 128, 128>}, {pipeline_mode = #tpu.pipeline_mode<synchronous>, transform_indices = @transform_2, window_bounds = array<i64: 1, 128>}, {pipeline_mode = #tpu.pipeline_mode<synchronous>, transform_indices = @transform_3, window_bounds = array<i64: 1, 128>}, {transform_indices = @transform_4, window_bounds = array<i64: 1, 8, 256>}]} {
    %c0 = arith.constant 0 : index
    %c0_0 = arith.constant 0 : index
    %c0_1 = arith.constant 0 : index
    %0 = vector.load %arg2[%c0, %c0_0, %c0_1] : memref<1x256x128xbf16, #tpu.memory_space<vmem>>, vector<1x256x128xbf16>
    %1 = vector.shape_cast %0 : vector<1x256x128xbf16> to vector<256x128xbf16>
    %c0_2 = arith.constant 0 : index
    %c0_3 = arith.constant 0 : index
    %2 = vector.load %arg3[%c0_2, %c0_3] : memref<128x128xbf16, #tpu.memory_space<vmem>>, vector<128x128xbf16>
    %cst = arith.constant dense<0.000000e+00> : vector<256x128xf32>
    %3 = tpu.matmul %1, %2, %cst {dimension_numbers = #tpu.dot_dimension_numbers<[1], [0], [0], [1], [0, 0, 1, 1], [], []>} : vector<256x128xbf16>, vector<128x128xbf16>, vector<256x128xf32> -> vector<256x128xf32>
    %c0_4 = arith.constant 0 : index
    %c0_5 = arith.constant 0 : index
    %4 = vector.load %arg4[%c0_4, %c0_5] : memref<1x128xf32, #tpu.memory_space<vmem>>, vector<1x128xf32>
    %5 = vector.broadcast %4 : vector<1x128xf32> to vector<256x128xf32>
    %6 = arith.mulf %3, %5 : vector<256x128xf32>
    %c0_6 = arith.constant 0 : index
    %c0_7 = arith.constant 0 : index
    %7 = vector.load %arg5[%c0_6, %c0_7] : memref<1x128xf32, #tpu.memory_space<vmem>>, vector<1x128xf32>
    %8 = vector.broadcast %7 : vector<1x128xf32> to vector<256x128xf32>
    %9 = arith.addf %6, %8 : vector<256x128xf32>
    %cst_8 = arith.constant 0.000000e+00 : f32
    %10 = vector.broadcast %cst_8 : f32 to vector<256x128xf32>
    %11 = arith.maximumf %9, %10 : vector<256x128xf32>
    %12 = tpu.transpose %11, [1, 0] : vector<256x128xf32> -> vector<128x256xf32>
    %13 = vector.extract_strided_slice %12 {offsets = [0, 0], sizes = [8, 256], strides = [1, 1]} : vector<128x256xf32> to vector<8x256xf32>
    %14 = vector.shape_cast %13 : vector<8x256xf32> to vector<1x8x256xf32>
    %c0_9 = arith.constant 0 : index
    %c0_10 = arith.constant 0 : index
    %c0_11 = arith.constant 0 : index
    %15 = vector.load %arg6[%c0_9, %c0_10, %c0_11] : memref<1x8x256xf32, #tpu.memory_space<vmem>>, vector<1x8x256xf32>
    tpu.vector_store %arg6[%c0_9, %c0_10, %c0_11], %14 {strides = array<i32>} : memref<1x8x256xf32, #tpu.memory_space<vmem>>, vector<1x8x256xf32>,
    return
  }
  func.func @transform_0(%arg0: i32, %arg1: i32) -> (i32, i32, i32) {
    %c0_i32 = arith.constant 0 : i32
    %c0_i32_0 = arith.constant 0 : i32
    return %arg0, %arg1, %c0_i32 : i32, i32, i32
  }
  func.func @transform_1(%arg0: i32, %arg1: i32) -> (i32, i32) {
    %c0_i32 = arith.constant 0 : i32
    %c0_i32_0 = arith.constant 0 : i32
    %c0_i32_1 = arith.constant 0 : i32
    return %c0_i32, %c0_i32_0 : i32, i32
  }
  func.func @transform_2(%arg0: i32, %arg1: i32) -> (i32, i32) {
    %c0_i32 = arith.constant 0 : i32
    %c0_i32_0 = arith.constant 0 : i32
    %c0_i32_1 = arith.constant 0 : i32
    return %c0_i32, %c0_i32_0 : i32, i32
  }
  func.func @transform_3(%arg0: i32, %arg1: i32) -> (i32, i32) {
    %c0_i32 = arith.constant 0 : i32
    %c0_i32_0 = arith.constant 0 : i32
    %c0_i32_1 = arith.constant 0 : i32
    return %c0_i32, %c0_i32_0 : i32, i32
  }
  func.func @transform_4(%arg0: i32, %arg1: i32) -> (i32, i32, i32) {
    %c0_i32 = arith.constant 0 : i32
    %c0_i32_0 = arith.constant 0 : i32
    return %arg0, %c0_i32, %arg1 : i32, i32, i32
  }
}

</mosaic_0001>

<bundles_post_ra>
// kernel: conv_relu_forward.3
= control target key start
LH: loop header
LB: loop body
LE: loop exit
PB: predicated region body
PF: predicated region fallthrough
CT: control target
= control target key end

     0   :  { %s1078_s15 = smov 0   ;;  %s1080_s16 = smov 0   ;;  %s1237_s0 = inlined_call_operand.vmem [shape: bf16[2,256,128], index: 0, kind: input, shape index: {}]   ;;  %s1238_s1 = inlined_call_operand.vmem [shape: bf16[128,128], index: 1, kind: input, shape index: {}]   ;;  %s1239_s2 = inlined_call_operand.vmem [shape: f32[1,128], index: 2, kind: input, shape index: {}]   ;;  %s1240_s3 = inlined_call_operand.vmem [shape: f32[1,128], index: 3, kind: input, shape index: {}]   ;;  %s1241_s4 = inlined_call_operand.vmem [shape: f32[2,8,256], index: 4, kind: output, shape index: {}]  }
   0x1   :  { %s1082_s17 = smov 0  }
   0x2 LB: > { %s26_s18 = sadd.s32 1, %s1047_s16  ;;  %p858_p0 = scmp.ge.s32.totalorder %s1051_s17, 1  ;;  %s1051_s17 = sphi %s1082_s17, %s14_s17   ;;  %s1047_s16 = sphi %s1080_s16, %s1243_s16   ;;  %s1043_s15 = sphi %s1078_s15, %s1242_s15  }
   0x3   : > { %p28_p1 = scmp.ge.s32.totalorder %s26_s18, 2  ;;  %p183_p2 = scmp.lt.s32.totalorder %s1051_s17, 3 }
   0x5   : > { %s1245_s18 = smov (%p28_p1, %s26_s18), 0  ;;  %p184_p3 = pnand %p858_p0, %p183_p2 }
   0x6   : > { %v1005_v0 = vld [vmem:[%s1238_s1] sm:$0xff] (!%p184_p3)   ;;  %p218_p4 = scmp.lt.s32.totalorder (!%p184_p3), %s1043_s15, 1  ;;  %v1006_v1 = vld [vmem:[%s1238_s1 + $0x8] sm:$0xff] (!%p184_p3)   ;;  %v1007_v2 = vld [vmem:[%s1238_s1 + $0x10] sm:$0xff] (!%p184_p3)  }
   0x7   : > { %187 = sbr.rel (%p184_p3) target bundleno = 388 (0x184), region = 36  ;;  %917 = vmatprep.subr.bf16.mxu0 (!%p184_p3), %v1005_v0  ;;  %965 = vmatprep.subr.bf16.mxu1 (!%p184_p3), %v1005_v0  ;;  %v1008_v3 = vld [vmem:[%s1238_s1 + $0x18] sm:$0xff] (!%p184_p3)   ;;  %v1009_v6 = vld [vmem:[%s1238_s1 + $0x20] sm:$0xff] (!%p184_p3)   ;;  %v1010_v7 = vld [vmem:[%s1238_s1 + $0x28] sm:$0xff] (!%p184_p3)  }
   0x8   : > { %918 = vmatpush3.bf16.msra.mxu0 (!%p184_p3), %v1005_v0  ;;  %973 = vmatpush3.bf16.msra.mxu1 (!%p184_p3), %v1005_v0  ;;  %v1011_v8 = vld [vmem:[%s1238_s1 + $0x30] sm:$0xff] (!%p184_p3)   ;;  %v1012_v9 = vld [vmem:[%s1238_s1 + $0x38] sm:$0xff] (!%p184_p3)   ;;  %v1147_v24 = vld [vmem:[%s1239_s2] ss:$0 sm:$0xff] (!%p184_p3) }
   0x9   : > { %919 = vmatprep.subr.bf16.mxu0 (!%p184_p3), %v1006_v1  ;;  %966 = vmatprep.subr.bf16.mxu1 (!%p184_p3), %v1006_v1  ;;  %v1152_v29 = vld [vmem:[%s1240_s3] ss:$0 sm:$0xff] (!%p184_p3) }
   0xc   : > { %920 = vmatpush3.bf16.msra.mxu0 (!%p184_p3), %v1006_v1  ;;  %974 = vmatpush3.bf16.msra.mxu1 (!%p184_p3), %v1006_v1 }
   0xd   : > { %921 = vmatprep.subr.bf16.mxu0 (!%p184_p3), %v1007_v2  ;;  %967 = vmatprep.subr.bf16.mxu1 (!%p184_p3), %v1007_v2 }
   0xe   : > { %s1247_s15 = smov (!%p218_p4, %s1043_s15), 1 }
   0xf   : > { %s891_s25 = sshll.u32 %s1247_s15, 7  ;;  %s892_s21 = sshll.u32 %s1247_s15, 4 }
  0x10   : > { %s1111_s28 = scalar_lea.vmem %s1237_s0, %s891_s25  ;;  %922 = vmatpush3.bf16.msra.mxu0 %v1007_v2  ;;  %975 = vmatpush3.bf16.msra.mxu1 %v1007_v2  ;;  %s235_s24 = scalar_lea.vmem %s1241_s4, %s892_s21 }
  0x11   : > { %v1013_v4 = vld [vmem:[%s1111_s28] sm:$0xff]   ;;  %923 = vmatprep.subr.bf16.mxu0 %v1008_v3  ;;  %968 = vmatprep.subr.bf16.mxu1 %v1008_v3  ;;  %v1015_v10 = vld [vmem:[%s1111_s28 + $0x8] sm:$0xff]   ;;  %v1017_v12 = vld [vmem:[%s1111_s28 + $0x10] sm:$0xff]  }
  0x12   : > { %v1014_v5 = vld [vmem:[%s1111_s28 + $0x40] sm:$0xff]   ;;  %933 = vmatprep.mubr.bf16.mxu0 %v1013_v4  ;;  %v1016_v11 = vld [vmem:[%s1111_s28 + $0x48] sm:$0xff]   ;;  %v1018_v13 = vld [vmem:[%s1111_s28 + $0x50] sm:$0xff]  }
  0x13   : > { %949 = vmatprep.mubr.bf16.mxu1 %v1014_v5  ;;  %v1019_v14 = vld [vmem:[%s1111_s28 + $0x18] sm:$0xff]   ;;  %v1021_v16 = vld [vmem:[%s1111_s28 + $0x20] sm:$0xff]   ;;  %v1023_v18 = vld [vmem:[%s1111_s28 + $0x28] sm:$0xff]  }
  0x14   : > { %924 = vmatpush3.bf16.msra.mxu0 %v1008_v3  ;;  %976 = vmatpush3.bf16.msra.mxu1 %v1008_v3  ;;  %v1020_v15 = vld [vmem:[%s1111_s28 + $0x58] sm:$0xff]   ;;  %v1022_v17 = vld [vmem:[%s1111_s28 + $0x60] sm:$0xff]   ;;  %v1024_v19 = vld [vmem:[%s1111_s28 + $0x68] sm:$0xff]  }
  0x15   : > { %925 = vmatprep.subr.bf16.mxu0 %v1009_v6  ;;  %969 = vmatprep.subr.bf16.mxu1 %v1009_v6  ;;  %v1025_v20 = vld [vmem:[%s1111_s28 + $0x30] sm:$0xff]   ;;  %v1027_v22 = vld [vmem:[%s1111_s28 + $0x38] sm:$0xff]  }
  0x16   : > { %v1026_v21 = vld [vmem:[%s1111_s28 + $0x70] sm:$0xff]   ;;  %v1028_v23 = vld [vmem:[%s1111_s28 + $0x78] sm:$0xff]  }
  0x18   : > { %926 = vmatpush3.bf16.msra.mxu0 %v1009_v6  ;;  %977 = vmatpush3.bf16.msra.mxu1 %v1009_v6 }
  0x19   : > { %927 = vmatprep.subr.bf16.mxu0 %v1010_v7  ;;  %970 = vmatprep.subr.bf16.mxu1 %v1010_v7 }
  0x1c   : > { %928 = vmatpush3.bf16.msra.mxu0 %v1010_v7  ;;  %978 = vmatpush3.bf16.msra.mxu1 %v1010_v7 }
  0x1d   : > { %929 = vmatprep.subr.bf16.mxu0 %v1011_v8  ;;  %971 = vmatprep.subr.bf16.mxu1 %v1011_v8 }
  0x20   : > { %930 = vmatpush3.bf16.msra.mxu0 %v1011_v8  ;;  %979 = vmatpush3.bf16.msra.mxu1 %v1011_v8 }
  0x21   : > { %931 = vmatprep.subr.bf16.mxu0 %v1012_v9  ;;  %972 = vmatprep.subr.bf16.mxu1 %v1012_v9 }
  0x24   : > { %932 = vmatpush3.bf16.msra.mxu0 %v1012_v9  ;;  %980 = vmatpush3.bf16.msra.mxu1 %v1012_v9 }
  0x27   : > { %934 = vmatmul.mubr.bf16.vlgmr.msra.gmra.mrb[0].mxu0 %v1015_v10  ;;  %950 = vmatmul.mubr.bf16.vlgmr.msra.gmra.mrb[0].mxu1 %v1016_v11 }
  0x28   : > { %937 = vmatprep.mubr.bf16.mxu0 %v1017_v12  ;;  %953 = vmatprep.mubr.bf16.mxu1 %v1018_v13 }
  0x2f   : > { %938 = vmatmul.mubr.bf16.gmra.mrb[4].mxu0 %v1019_v14  ;;  %954 = vmatmul.mubr.bf16.gmra.mrb[4].mxu1 %v1020_v15 }
  0x30   : > { %941 = vmatprep.mubr.bf16.mxu0 %v1021_v16  ;;  %957 = vmatprep.mubr.bf16.mxu1 %v1022_v17 }
  0x37   : > { %942 = vmatmul.mubr.bf16.gmra.mrb[8].mxu0 %v1023_v18  ;;  %958 = vmatmul.mubr.bf16.gmra.mrb[8].mxu1 %v1024_v19 }
  0x38   : > { %945 = vmatprep.mubr.bf16.mxu0 %v1025_v20  ;;  %961 = vmatprep.mubr.bf16.mxu1 %v1026_v21 }
  0x3f   : > { %946 = vmatmul.mubr.bf16.gmra.mrb[12].mxu0 %v1027_v22  ;;  %962 = vmatmul.mubr.bf16.gmra.mrb[12].mxu1 %v1028_v23 }
  0xfa   : > { %v935_v25 = vpop.f32.mrb[0].mxu0  ;;  %v951_v26 = vpop.f32.mrb[0].mxu1 }
  0xfb   : > { %v464_v27 = vpop.f32.mrb[1].mxu0  ;;  %v528_v28 = vpop.f32.mrb[1].mxu1  ;;  %v600_v40 = vmul.f32 %v935_v25, %v1147_v24  ;;  %v616_v41 = vmul.f32 %v951_v26, %v1147_v24 }
  0xfc   : > { %v598_v30 = vmul.f32 %v1147_v24, %v464_v27  ;;  %v614_v31 = vmul.f32 %v1147_v24, %v528_v28  ;;  %v936_v32 = vpop.f32.mrb[2].mxu0  ;;  %v952_v33 = vpop.f32.mrb[2].mxu1 }
  0xfd   : > { %v467_v34 = vpop.f32.mrb[3].mxu0  ;;  %v531_v35 = vpop.f32.mrb[3].mxu1  ;;  %v601_v48 = vmul.f32 %v936_v32, %v1147_v24  ;;  %v617_v49 = vmul.f32 %v952_v33, %v1147_v24  ;;  %v655_v56 = vadd.f32 %v1152_v29, %v616_v41  ;;  %v639_v57 = vadd.f32 %v1152_v29, %v600_v40 }
  0xfe   : > { %v599_v36 = vmul.f32 %v1147_v24, %v467_v34  ;;  %v615_v37 = vmul.f32 %v1147_v24, %v531_v35  ;;  %v653_v38 = vadd.f32 %v1152_v29, %v614_v31  ;;  %v637_v39 = vadd.f32 %v1152_v29, %v598_v30 }
  0xff   : > { %v687_v62 = vmax.f32 %v655_v56, 0.0  ;;  %v671_v63 = vmax.f32 %v639_v57, 0.0  ;;  %v656_v0 = vadd.f32 %v1152_v29, %v617_v49  ;;  %v640_v1 = vadd.f32 %v1152_v29, %v601_v48 }
 0x100   : > { %v685_v42 = vmax.f32 %v653_v38, 0.0  ;;  %v669_v43 = vmax.f32 %v637_v39, 0.0  ;;  %v654_v44 = vadd.f32 %v1152_v29, %v615_v37  ;;  %v638_v45 = vadd.f32 %v1152_v29, %v599_v36 }
 0x101   : > { %v688_v10 = vmax.f32 %v656_v0, 0.0  ;;  %v672_v11 = vmax.f32 %v640_v1, 0.0 }
 0x102   : > { %733 = vxpose.xlu1.b32.start [1/16] (narrow) %v685_v42, 8  ;;  %701 = vxpose.xlu0.b32.start [1/16] (narrow) %v669_v43, 8  ;;  %v939_v46 = vpop.f32.mrb[4].mxu0  ;;  %v955_v47 = vpop.f32.mrb[4].mxu1  ;;  %v686_v52 = vmax.f32 %v654_v44, 0.0  ;;  %v670_v53 = vmax.f32 %v638_v45, 0.0 }
 0x103   : > { %v480_v50 = vpop.f32.mrb[5].mxu0  ;;  %v544_v51 = vpop.f32.mrb[5].mxu1  ;;  %v604_v18 = vmul.f32 %v939_v46, %v1147_v24  ;;  %v620_v19 = vmul.f32 %v955_v47, %v1147_v24 }
 0x104   : > { %v940_v54 = vpop.f32.mrb[6].mxu0  ;;  %v956_v55 = vpop.f32.mrb[6].mxu1  ;;  %v602_v60 = vmul.f32 %v1147_v24, %v480_v50  ;;  %v618_v61 = vmul.f32 %v1147_v24, %v544_v51 }
 0x105   : > { %v547_v58 = vpop.f32.mrb[7].mxu1  ;;  %v483_v59 = vpop.f32.mrb[7].mxu0  ;;  %v605_v25 = vmul.f32 %v940_v54, %v1147_v24  ;;  %v621_v26 = vmul.f32 %v956_v55, %v1147_v24  ;;  %v659_v32 = vadd.f32 %v1152_v29, %v620_v19  ;;  %v643_v33 = vadd.f32 %v1152_v29, %v604_v18 }
 0x106   : > { %734 = vxpose.xlu1.b32.cont [2/16] (narrow) %v686_v52, 8  ;;  %702 = vxpose.xlu0.b32.cont [2/16] (narrow) %v670_v53, 8  ;;  %v657_v2 = vadd.f32 %v1152_v29, %v618_v61  ;;  %v641_v3 = vadd.f32 %v1152_v29, %v602_v60  ;;  %v619_v8 = vmul.f32 %v1147_v24, %v547_v58 }
 0x107   : > { %v603_v9 = vmul.f32 %v1147_v24, %v483_v59  ;;  %v691_v40 = vmax.f32 %v659_v32, 0.0  ;;  %v675_v41 = vmax.f32 %v643_v33, 0.0  ;;  %v660_v42 = vadd.f32 %v1152_v29, %v621_v26 }
 0x108   : > { %v689_v16 = vmax.f32 %v657_v2, 0.0  ;;  %v673_v17 = vmax.f32 %v641_v3, 0.0  ;;  %v658_v20 = vadd.f32 %v1152_v29, %v619_v8  ;;  %v644_v43 = vadd.f32 %v1152_v29, %v605_v25 }
 0x109   : > { %v642_v21 = vadd.f32 %v1152_v29, %v603_v9  ;;  %v692_v48 = vmax.f32 %v660_v42, 0.0 }
 0x10a   : > { %735 = vxpose.xlu1.b32.cont [3/16] (narrow) %v687_v62, 8  ;;  %703 = vxpose.xlu0.b32.cont [3/16] (narrow) %v671_v63, 8  ;;  %v943_v4 = vpop.f32.mrb[8].mxu0  ;;  %v959_v5 = vpop.f32.mrb[8].mxu1  ;;  %v690_v30 = vmax.f32 %v658_v20, 0.0  ;;  %v676_v49 = vmax.f32 %v644_v43, 0.0 }
 0x10b   : > { %v496_v6 = vpop.f32.mrb[9].mxu0  ;;  %v560_v7 = vpop.f32.mrb[9].mxu1  ;;  %v674_v31 = vmax.f32 %v642_v21, 0.0  ;;  %v608_v52 = vmul.f32 %v943_v4, %v1147_v24  ;;  %v624_v53 = vmul.f32 %v959_v5, %v1147_v24 }
 0x10c   : > { %v944_v12 = vpop.f32.mrb[10].mxu0  ;;  %v960_v13 = vpop.f32.mrb[10].mxu1  ;;  %v606_v38 = vmul.f32 %v1147_v24, %v496_v6  ;;  %v622_v39 = vmul.f32 %v1147_v24, %v560_v7 }
 0x10d   : > { %v563_v14 = vpop.f32.mrb[11].mxu1  ;;  %v499_v15 = vpop.f32.mrb[11].mxu0  ;;  %v609_v56 = vmul.f32 %v944_v12, %v1147_v24  ;;  %v625_v57 = vmul.f32 %v960_v13, %v1147_v24  ;;  %v663_v60 = vadd.f32 %v1152_v29, %v624_v53  ;;  %v647_v61 = vadd.f32 %v1152_v29, %v608_v52 }
 0x10e   : > { %736 = vxpose.xlu1.b32.cont [4/16] (narrow) %v688_v10, 8  ;;  %704 = vxpose.xlu0.b32.cont [4/16] (narrow) %v672_v11, 8  ;;  %v661_v44 = vadd.f32 %v1152_v29, %v622_v39  ;;  %v645_v45 = vadd.f32 %v1152_v29, %v606_v38  ;;  %v623_v46 = vmul.f32 %v1147_v24, %v563_v14 }
 0x10f   : > { %v607_v47 = vmul.f32 %v1147_v24, %v499_v15  ;;  %v695_v0 = vmax.f32 %v663_v60, 0.0  ;;  %v679_v1 = vmax.f32 %v647_v61, 0.0  ;;  %v664_v2 = vadd.f32 %v1152_v29, %v625_v57 }
 0x110   : > { %v693_v50 = vmax.f32 %v661_v44, 0.0  ;;  %v677_v51 = vmax.f32 %v645_v45, 0.0  ;;  %v662_v54 = vadd.f32 %v1152_v29, %v623_v46  ;;  %v648_v3 = vadd.f32 %v1152_v29, %v609_v56 }
 0x111   : > { %v646_v55 = vadd.f32 %v1152_v29, %v607_v47  ;;  %v696_v8 = vmax.f32 %v664_v2, 0.0 }
 0x112   : > { %737 = vxpose.xlu1.b32.cont [5/16] (narrow) %v689_v16, 8  ;;  %705 = vxpose.xlu0.b32.cont [5/16] (narrow) %v673_v17, 8  ;;  %v1180_v22 = vpop.f32.mrb[12].mxu0  ;;  %v1182_v23 = vpop.f32.mrb[12].mxu1  ;;  %v694_v58 = vmax.f32 %v662_v54, 0.0  ;;  %v680_v9 = vmax.f32 %v648_v3, 0.0 }
 0x113   : > { %v512_v27 = vpop.f32.mrb[13].mxu0  ;;  %v576_v28 = vpop.f32.mrb[13].mxu1  ;;  %v678_v59 = vmax.f32 %v646_v55, 0.0  ;;  %v612_v12 = vmul.f32 %v1180_v22, %v1147_v24  ;;  %v628_v13 = vmul.f32 %v1182_v23, %v1147_v24 }
 0x114   : > { %v948_v34 = vpop.f32.mrb[14].mxu0  ;;  %v964_v35 = vpop.f32.mrb[14].mxu1  ;;  %v610_v62 = vmul.f32 %v1147_v24, %v512_v27  ;;  %v626_v63 = vmul.f32 %v1147_v24, %v576_v28 }
 0x115   : > { %v579_v36 = vpop.f32.mrb[15].mxu1  ;;  %v515_v37 = vpop.f32.mrb[15].mxu0  ;;  %v613_v16 = vmul.f32 %v948_v34, %v1147_v24  ;;  %v629_v17 = vmul.f32 %v964_v35, %v1147_v24  ;;  %v667_v20 = vadd.f32 %v1152_v29, %v628_v13  ;;  %v651_v21 = vadd.f32 %v1152_v29, %v612_v12 }
 0x116   : > { %738 = vxpose.xlu1.b32.cont [6/16] (narrow) %v690_v30, 8  ;;  %706 = vxpose.xlu0.b32.cont [6/16] (narrow) %v674_v31, 8  ;;  %v665_v4 = vadd.f32 %v1152_v29, %v626_v63  ;;  %v649_v5 = vadd.f32 %v1152_v29, %v610_v62  ;;  %v627_v6 = vmul.f32 %v1147_v24, %v579_v36 }
 0x117   : > { %v611_v7 = vmul.f32 %v1147_v24, %v515_v37  ;;  %v699_v22 = vmax.f32 %v667_v20, 0.0  ;;  %v683_v23 = vmax.f32 %v651_v21, 0.0  ;;  %v668_v25 = vadd.f32 %v1152_v29, %v629_v17 }
 0x118   : > { %v697_v10 = vmax.f32 %v665_v4, 0.0  ;;  %v681_v11 = vmax.f32 %v649_v5, 0.0  ;;  %v666_v14 = vadd.f32 %v1152_v29, %v627_v6  ;;  %v652_v26 = vadd.f32 %v1152_v29, %v613_v16 }
 0x119   : > { %v650_v15 = vadd.f32 %v1152_v29, %v611_v7  ;;  %v700_v27 = vmax.f32 %v668_v25, 0.0 }
 0x11a   : > { %739 = vxpose.xlu1.b32.cont [7/16] (narrow) %v691_v40, 8  ;;  %707 = vxpose.xlu0.b32.cont [7/16] (narrow) %v675_v41, 8  ;;  %v698_v18 = vmax.f32 %v666_v14, 0.0  ;;  %v684_v28 = vmax.f32 %v652_v26, 0.0 }
 0x11b   : > { %v682_v19 = vmax.f32 %v650_v15, 0.0 }
 0x11e   : > { %740 = vxpose.xlu1.b32.cont [8/16] (narrow) %v692_v48, 8  ;;  %708 = vxpose.xlu0.b32.cont [8/16] (narrow) %v676_v49, 8 }
 0x122   : > { %741 = vxpose.xlu1.b32.cont [9/16] (narrow) %v693_v50, 8  ;;  %709 = vxpose.xlu0.b32.cont [9/16] (narrow) %v677_v51, 8 }
 0x126   : > { %742 = vxpose.xlu1.b32.cont [10/16] (narrow) %v694_v58, 8  ;;  %710 = vxpose.xlu0.b32.cont [10/16] (narrow) %v678_v59, 8 }
 0x12a   : > { %743 = vxpose.xlu1.b32.cont [11/16] (narrow) %v695_v0, 8  ;;  %711 = vxpose.xlu0.b32.cont [11/16] (narrow) %v679_v1, 8 }
 0x12e   : > { %744 = vxpose.xlu1.b32.cont [12/16] (narrow) %v696_v8, 8  ;;  %712 = vxpose.xlu0.b32.cont [12/16] (narrow) %v680_v9, 8 }
 0x132   : > { %745 = vxpose.xlu1.b32.cont [13/16] (narrow) %v697_v10, 8  ;;  %713 = vxpose.xlu0.b32.cont [13/16] (narrow) %v681_v11, 8 }
 0x136   : > { %746 = vxpose.xlu1.b32.cont [14/16] (narrow) %v698_v18, 8  ;;  %714 = vxpose.xlu0.b32.cont [14/16] (narrow) %v682_v19, 8 }
 0x13a   : > { %747 = vxpose.xlu1.b32.cont [15/16] (narrow) %v699_v22, 8  ;;  %715 = vxpose.xlu0.b32.cont [15/16] (narrow) %v683_v23, 8 }
 0x13e   : > { %748 = vxpose.xlu1.b32.end [16/16] (narrow) %v700_v27, 8  ;;  %716 = vxpose.xlu0.b32.end [16/16] (narrow) %v684_v28, 8 }
 0x182   : > { %v749_v24 = vpop.trf.xlu1  ;;  %v717_v30 = vpop.trf.xlu0 }
 0x183   : > { %766 = vst [vmem:[%s235_s24 + $0x8] sm:$0xff] %v749_v24  ;;  %765 = vst [vmem:[%s235_s24] sm:$0xff] %v717_v30 }
 0x184 PF: > { %s14_s17 = sadd.s32 1, %s1051_s17   ;;  %s1242_s15 = smov %s1047_s16 }
 0x185   : > { %p11_p5 = scmp.ge.s32.totalorder %s14_s17, 4   ;;  %s1243_s16 = smov %s1245_s18 }
 0x187   :  { %13 = sbr.rel (!%p11_p5) target bundleno = 2 (0x2), region = 66 }

// kernel: conv_relu_forward.2
= control target key start
LH: loop header
LB: loop body
LE: loop exit
PB: predicated region body
PF: predicated region fallthrough
CT: control target
= control target key end

     0   :  { %s928_s9 = smov 0   ;;  %s930_s10 = smov 0   ;;  %s1057_s0 = inlined_call_operand.vmem [shape: bf16[2,256,128], index: 0, kind: input, shape index: {}]   ;;  %s1058_s1 = inlined_call_operand.vmem [shape: bf16[128,128], index: 1, kind: input, shape index: {}]   ;;  %s1059_s2 = inlined_call_operand.vmem [shape: f32[2,1,2,128], index: 2, kind: output, shape index: {}]  }
   0x1   :  { %s932_s11 = smov 0  }
   0x2 LB: > { %s24_s12 = sadd.s32 1, %s907_s10  ;;  %p722_p0 = scmp.ge.s32.totalorder %s911_s11, 1  ;;  %s911_s11 = sphi %s932_s11, %s12_s11   ;;  %s907_s10 = sphi %s930_s10, %s1061_s10   ;;  %s903_s9 = sphi %s928_s9, %s1060_s9  }
   0x3   : > { %p26_p1 = scmp.ge.s32.totalorder %s24_s12, 2  ;;  %p133_p2 = scmp.lt.s32.totalorder %s911_s11, 3 }
   0x5   : > { %s1063_s12 = smov (%p26_p1, %s24_s12), 0  ;;  %p134_p3 = pnand %p722_p0, %p133_p2 }
   0x6   : > { %v865_v0 = vld [vmem:[%s1058_s1] sm:$0xff] (!%p134_p3)   ;;  %p162_p4 = scmp.lt.s32.totalorder (!%p134_p3), %s903_s9, 1  ;;  %v866_v1 = vld [vmem:[%s1058_s1 + $0x8] sm:$0xff] (!%p134_p3)   ;;  %v867_v2 = vld [vmem:[%s1058_s1 + $0x10] sm:$0xff] (!%p134_p3)   ;;  %vm638_vm0 = vcmask (!%p134_p3), 1040384  }
   0x7   : > { %137 = sbr.rel (%p134_p3) target bundleno = 332 (0x14c), region = 28  ;;  %777 = vmatprep.subr.bf16.mxu0 (!%p134_p3), %v865_v0  ;;  %825 = vmatprep.subr.bf16.mxu1 (!%p134_p3), %v865_v0  ;;  %v868_v3 = vld [vmem:[%s1058_s1 + $0x18] sm:$0xff] (!%p134_p3)   ;;  %v869_v5 = vld [vmem:[%s1058_s1 + $0x20] sm:$0xff] (!%p134_p3)   ;;  %v870_v6 = vld [vmem:[%s1058_s1 + $0x28] sm:$0xff] (!%p134_p3)  }
   0x8   : > { %778 = vmatpush3.bf16.msra.mxu0 (!%p134_p3), %v865_v0  ;;  %833 = vmatpush3.bf16.msra.mxu1 (!%p134_p3), %v865_v0  ;;  %v871_v8 = vld [vmem:[%s1058_s1 + $0x30] sm:$0xff] (!%p134_p3)   ;;  %v872_v9 = vld [vmem:[%s1058_s1 + $0x38] sm:$0xff] (!%p134_p3)  }
   0x9   : > { %779 = vmatprep.subr.bf16.mxu0 (!%p134_p3), %v866_v1  ;;  %826 = vmatprep.subr.bf16.mxu1 (!%p134_p3), %v866_v1 }
   0xc   : > { %780 = vmatpush3.bf16.msra.mxu0 (!%p134_p3), %v866_v1  ;;  %834 = vmatpush3.bf16.msra.mxu1 (!%p134_p3), %v866_v1 }
   0xd   : > { %781 = vmatprep.subr.bf16.mxu0 (!%p134_p3), %v867_v2  ;;  %827 = vmatprep.subr.bf16.mxu1 (!%p134_p3), %v867_v2 }
   0xe   : > { %s1065_s9 = smov (!%p162_p4, %s903_s9), 1 }
   0xf   : > { %s752_s19 = sshll.u32 %s1065_s9, 7  ;;  %s725_s5 = sshll.u32 %s1065_s9, 1 }
  0x10   : > { %s961_s22 = scalar_lea.vmem %s1057_s0, %s752_s19  ;;  %782 = vmatpush3.bf16.msra.mxu0 %v867_v2  ;;  %835 = vmatpush3.bf16.msra.mxu1 %v867_v2  ;;  %s177_s8 = scalar_lea.vmem %s1059_s2, %s725_s5 }
  0x11   : > { %v873_v4 = vld [vmem:[%s961_s22] sm:$0xff]   ;;  %783 = vmatprep.subr.bf16.mxu0 %v868_v3  ;;  %828 = vmatprep.subr.bf16.mxu1 %v868_v3  ;;  %v874_v10 = vld [vmem:[%s961_s22 + $0x8] sm:$0xff]   ;;  %v875_v12 = vld [vmem:[%s961_s22 + $0x10] sm:$0xff]  }
  0x12   : > { %793 = vmatprep.mubr.bf16.mxu0 %v873_v4  ;;  %v881_v7 = vld [vmem:[%s961_s22 + $0x40] sm:$0xff]   ;;  %v882_v11 = vld [vmem:[%s961_s22 + $0x48] sm:$0xff]   ;;  %v883_v13 = vld [vmem:[%s961_s22 + $0x50] sm:$0xff]  }
  0x13   : > { %809 = vmatprep.mubr.bf16.mxu1 %v881_v7  ;;  %v876_v14 = vld [vmem:[%s961_s22 + $0x18] sm:$0xff]   ;;  %v877_v16 = vld [vmem:[%s961_s22 + $0x20] sm:$0xff]   ;;  %v878_v18 = vld [vmem:[%s961_s22 + $0x28] sm:$0xff]  }
  0x14   : > { %784 = vmatpush3.bf16.msra.mxu0 %v868_v3  ;;  %836 = vmatpush3.bf16.msra.mxu1 %v868_v3  ;;  %v884_v15 = vld [vmem:[%s961_s22 + $0x58] sm:$0xff]   ;;  %v885_v17 = vld [vmem:[%s961_s22 + $0x60] sm:$0xff]   ;;  %v886_v19 = vld [vmem:[%s961_s22 + $0x68] sm:$0xff]  }
  0x15   : > { %785 = vmatprep.subr.bf16.mxu0 %v869_v5  ;;  %829 = vmatprep.subr.bf16.mxu1 %v869_v5  ;;  %v879_v20 = vld [vmem:[%s961_s22 + $0x30] sm:$0xff]   ;;  %v880_v22 = vld [vmem:[%s961_s22 + $0x38] sm:$0xff]  }
  0x16   : > { %v887_v21 = vld [vmem:[%s961_s22 + $0x70] sm:$0xff]   ;;  %v888_v23 = vld [vmem:[%s961_s22 + $0x78] sm:$0xff]  }
  0x18   : > { %786 = vmatpush3.bf16.msra.mxu0 %v869_v5  ;;  %837 = vmatpush3.bf16.msra.mxu1 %v869_v5 }
  0x19   : > { %787 = vmatprep.subr.bf16.mxu0 %v870_v6  ;;  %830 = vmatprep.subr.bf16.mxu1 %v870_v6 }
  0x1c   : > { %788 = vmatpush3.bf16.msra.mxu0 %v870_v6  ;;  %838 = vmatpush3.bf16.msra.mxu1 %v870_v6 }
  0x1d   : > { %789 = vmatprep.subr.bf16.mxu0 %v871_v8  ;;  %831 = vmatprep.subr.bf16.mxu1 %v871_v8 }
  0x20   : > { %790 = vmatpush3.bf16.msra.mxu0 %v871_v8  ;;  %839 = vmatpush3.bf16.msra.mxu1 %v871_v8 }
  0x21   : > { %791 = vmatprep.subr.bf16.mxu0 %v872_v9  ;;  %832 = vmatprep.subr.bf16.mxu1 %v872_v9 }
  0x24   : > { %792 = vmatpush3.bf16.msra.mxu0 %v872_v9  ;;  %840 = vmatpush3.bf16.msra.mxu1 %v872_v9 }
  0x27   : > { %794 = vmatmul.mubr.bf16.vlgmr.msra.gmra.mrb[0].mxu0 %v874_v10  ;;  %810 = vmatmul.mubr.bf16.vlgmr.msra.gmra.mrb[0].mxu1 %v882_v11 }
  0x28   : > { %797 = vmatprep.mubr.bf16.mxu0 %v875_v12  ;;  %813 = vmatprep.mubr.bf16.mxu1 %v883_v13 }
  0x2f   : > { %798 = vmatmul.mubr.bf16.gmra.mrb[4].mxu0 %v876_v14  ;;  %814 = vmatmul.mubr.bf16.gmra.mrb[4].mxu1 %v884_v15 }
  0x30   : > { %801 = vmatprep.mubr.bf16.mxu0 %v877_v16  ;;  %817 = vmatprep.mubr.bf16.mxu1 %v885_v17 }
  0x37   : > { %802 = vmatmul.mubr.bf16.gmra.mrb[8].mxu0 %v878_v18  ;;  %818 = vmatmul.mubr.bf16.gmra.mrb[8].mxu1 %v886_v19 }
  0x38   : > { %805 = vmatprep.mubr.bf16.mxu0 %v879_v20  ;;  %821 = vmatprep.mubr.bf16.mxu1 %v887_v21 }
  0x3f   : > { %806 = vmatmul.mubr.bf16.gmra.mrb[12].mxu0 %v880_v22  ;;  %822 = vmatmul.mubr.bf16.gmra.mrb[12].mxu1 %v888_v23 }
  0xfa   : > { %v795_v24 = vpop.f32.mrb[0].mxu0  ;;  %v994_v25 = vpop.f32.mrb[0].mxu1 }
  0xfb   : > { %v405_v26 = vpop.f32.mrb[1].mxu0  ;;  %v996_v27 = vpop.f32.mrb[1].mxu1  ;;  %v571_v35 = vmul.f32 %v795_v24, %v795_v24 }
  0xfc   : > { %v796_v28 = vpop.f32.mrb[2].mxu0  ;;  %v998_v29 = vpop.f32.mrb[2].mxu1  ;;  %v569_v32 = vmul.f32 %v405_v26, %v405_v26 }
  0xfd   : > { %v408_v30 = vpop.f32.mrb[3].mxu0  ;;  %v1000_v31 = vpop.f32.mrb[3].mxu1  ;;  %v572_v38 = vmul.f32 %v796_v28, %v796_v28 }
  0xfe   : > { %v532_v33 = vadd.f32 %v408_v30, %v405_v26  ;;  %v570_v34 = vmul.f32 %v408_v30, %v408_v30 }
 0x100   : > { %v533_v36 = vadd.f32 %v795_v24, %v532_v33  ;;  %v601_v37 = vadd.f32 %v570_v34, %v569_v32 }
 0x102   : > { %v602_v39 = vadd.f32 %v601_v37, %v571_v35  ;;  %v799_v40 = vpop.f32.mrb[4].mxu0  ;;  %v534_v41 = vadd.f32 %v796_v28, %v533_v36  ;;  %v1002_v42 = vpop.f32.mrb[4].mxu1 }
 0x103   : > { %v421_v43 = vpop.f32.mrb[5].mxu0  ;;  %v1004_v44 = vpop.f32.mrb[5].mxu1  ;;  %v575_v55 = vmul.f32 %v799_v40, %v799_v40 }
 0x104   : > { %v535_v45 = vadd.f32 %v534_v41, %v421_v43  ;;  %v573_v46 = vmul.f32 %v421_v43, %v421_v43  ;;  %v603_v47 = vadd.f32 %v602_v39, %v572_v38  ;;  %v800_v48 = vpop.f32.mrb[6].mxu0  ;;  %v1006_v49 = vpop.f32.mrb[6].mxu1  ;;  %v585_v41 = vmul.f32 %v996_v27, %v996_v27 }
 0x105   : > { %v424_v50 = vpop.f32.mrb[7].mxu0  ;;  %v1008_v51 = vpop.f32.mrb[7].mxu1  ;;  %v576_v58 = vmul.f32 %v800_v48, %v800_v48 }
 0x106   : > { %v604_v52 = vadd.f32 %v603_v47, %v573_v46  ;;  %v536_v53 = vadd.f32 %v535_v45, %v424_v50  ;;  %v574_v54 = vmul.f32 %v424_v50, %v424_v50  ;;  %v587_v50 = vmul.f32 %v994_v25, %v994_v25 }
 0x108   : > { %v537_v56 = vadd.f32 %v799_v40, %v536_v53  ;;  %v605_v57 = vadd.f32 %v604_v52, %v574_v54  ;;  %v588_v54 = vmul.f32 %v998_v29, %v998_v29 }
 0x10a   : > { %v606_v59 = vadd.f32 %v605_v57, %v575_v55  ;;  %v803_v60 = vpop.f32.mrb[8].mxu0  ;;  %v538_v61 = vadd.f32 %v800_v48, %v537_v56  ;;  %v1010_v62 = vpop.f32.mrb[8].mxu1  ;;  %v586_v48 = vmul.f32 %v1000_v31, %v1000_v31 }
 0x10b   : > { %v437_v63 = vpop.f32.mrb[9].mxu0  ;;  %v501_v0 = vpop.f32.mrb[9].mxu1  ;;  %v579_v11 = vmul.f32 %v803_v60, %v803_v60 }
 0x10c   : > { %v539_v1 = vadd.f32 %v538_v61, %v437_v63  ;;  %v577_v2 = vmul.f32 %v437_v63, %v437_v63  ;;  %v607_v3 = vadd.f32 %v606_v59, %v576_v58  ;;  %v804_v4 = vpop.f32.mrb[10].mxu0  ;;  %v1012_v5 = vpop.f32.mrb[10].mxu1 }
 0x10d   : > { %v440_v6 = vpop.f32.mrb[11].mxu0  ;;  %v504_v7 = vpop.f32.mrb[11].mxu1  ;;  %v580_v14 = vmul.f32 %v804_v4, %v804_v4 }
 0x10e   : > { %v608_v8 = vadd.f32 %v607_v3, %v577_v2  ;;  %v540_v9 = vadd.f32 %v539_v1, %v440_v6  ;;  %v578_v10 = vmul.f32 %v440_v6, %v440_v6 }
 0x110   : > { %v541_v12 = vadd.f32 %v803_v60, %v540_v9  ;;  %v609_v13 = vadd.f32 %v608_v8, %v578_v10  ;;  %v590_v60 = vmul.f32 %v1008_v51, %v1008_v51  ;;  %v594_v9 = vmul.f32 %v504_v7, %v504_v7 }
 0x112   : > { %v610_v15 = vadd.f32 %v609_v13, %v579_v11  ;;  %v807_v16 = vpop.f32.mrb[12].mxu0  ;;  %v542_v17 = vadd.f32 %v804_v4, %v541_v12  ;;  %v823_v18 = vpop.f32.mrb[12].mxu1 }
 0x113   : > { %v453_v19 = vpop.f32.mrb[13].mxu0  ;;  %v517_v20 = vpop.f32.mrb[13].mxu1  ;;  %v583_v35 = vmul.f32 %v807_v16, %v807_v16 }
 0x114   : > { %v543_v21 = vadd.f32 %v542_v17, %v453_v19  ;;  %v581_v22 = vmul.f32 %v453_v19, %v453_v19  ;;  %v611_v23 = vadd.f32 %v610_v15, %v580_v14  ;;  %v808_v24 = vpop.f32.mrb[14].mxu0  ;;  %v824_v26 = vpop.f32.mrb[14].mxu1  ;;  %v597_v14 = vmul.f32 %v517_v20, %v517_v20 }
 0x115   : > { %v456_v28 = vpop.f32.mrb[15].mxu0  ;;  %v520_v30 = vpop.f32.mrb[15].mxu1  ;;  %v584_v38 = vmul.f32 %v808_v24, %v808_v24  ;;  %v599_v19 = vmul.f32 %v823_v18, %v823_v18 }
 0x116   : > { %v612_v32 = vadd.f32 %v611_v23, %v581_v22  ;;  %v544_v33 = vadd.f32 %v543_v21, %v456_v28  ;;  %v582_v34 = vmul.f32 %v456_v28, %v456_v28  ;;  %v598_v17 = vmul.f32 %v520_v30, %v520_v30 }
 0x117   : > { %v600_v22 = vmul.f32 %v824_v26, %v824_v26 }
 0x118   : > { %v545_v36 = vadd.f32 %v807_v16, %v544_v33  ;;  %v613_v37 = vadd.f32 %v612_v32, %v582_v34 }
 0x11a   : > { %v614_v39 = vadd.f32 %v613_v37, %v583_v35  ;;  %v546_v40 = vadd.f32 %v808_v24, %v545_v36 }
 0x11c   : > { %v547_v43 = vadd.f32 %v546_v40, %v996_v27  ;;  %v615_v45 = vadd.f32 %v614_v39, %v584_v38  ;;  %v589_v27 = vmul.f32 %v1004_v44, %v1004_v44 }
 0x11e   : > { %v616_v46 = vadd.f32 %v615_v45, %v585_v41  ;;  %v548_v47 = vadd.f32 %v547_v43, %v1000_v31 }
 0x120   : > { %v549_v52 = vadd.f32 %v994_v25, %v548_v47  ;;  %v617_v53 = vadd.f32 %v616_v46, %v586_v48  ;;  %v591_v25 = vmul.f32 %v1002_v42, %v1002_v42 }
 0x122   : > { %v618_v55 = vadd.f32 %v617_v53, %v587_v50  ;;  %v550_v56 = vadd.f32 %v998_v29, %v549_v52  ;;  %v592_v29 = vmul.f32 %v1006_v49, %v1006_v49 }
 0x124   : > { %v551_v57 = vadd.f32 %v550_v56, %v1004_v44  ;;  %v619_v58 = vadd.f32 %v618_v55, %v588_v54  ;;  %v593_v44 = vmul.f32 %v501_v0, %v501_v0 }
 0x126   : > { %v620_v59 = vadd.f32 %v619_v58, %v589_v27  ;;  %v552_v31 = vadd.f32 %v551_v57, %v1008_v51  ;;  %v595_v51 = vmul.f32 %v1010_v62, %v1010_v62 }
 0x128   : > { %v553_v61 = vadd.f32 %v1002_v42, %v552_v31  ;;  %v621_v63 = vadd.f32 %v620_v59, %v590_v60  ;;  %v596_v42 = vmul.f32 %v1012_v5, %v1012_v5 }
 0x12a   : > { %v622_v1 = vadd.f32 %v621_v63, %v591_v25  ;;  %v554_v2 = vadd.f32 %v1006_v49, %v553_v61 }
 0x12c   : > { %v555_v3 = vadd.f32 %v554_v2, %v501_v0  ;;  %v623_v4 = vadd.f32 %v622_v1, %v592_v29 }
 0x12e   : > { %v624_v6 = vadd.f32 %v623_v4, %v593_v44  ;;  %v556_v8 = vadd.f32 %v555_v3, %v504_v7 }
 0x130   : > { %v557_v10 = vadd.f32 %v1010_v62, %v556_v8  ;;  %v625_v11 = vadd.f32 %v624_v6, %v594_v9 }
 0x132   : > { %v626_v12 = vadd.f32 %v625_v11, %v595_v51  ;;  %v558_v13 = vadd.f32 %v1012_v5, %v557_v10 }
 0x134   : > { %v559_v49 = vadd.f32 %v558_v13, %v517_v20  ;;  %v627_v15 = vadd.f32 %v626_v12, %v596_v42 }
 0x136   : > { %v628_v0 = vadd.f32 %v627_v15, %v597_v14  ;;  %v560_v16 = vadd.f32 %v559_v49, %v520_v30 }
 0x138   : > { %v561_v7 = vadd.f32 %v823_v18, %v560_v16  ;;  %v629_v21 = vadd.f32 %v628_v0, %v598_v17 }
 0x13a   : > { %v562_v23 = vadd.f32 %v824_v26, %v561_v7  ;;  %v630_v62 = vadd.f32 %v629_v21, %v599_v19 }
 0x13c   : > { %v563_v24 = vrot.slane %v562_v23, 4  ;;  %v631_v28 = vadd.f32 %v630_v62, %v600_v22 }
 0x13e   : > { %v564_v32 = vadd.f32 %v563_v24, %v562_v23  ;;  %v632_v33 = vrot.slane %v631_v28, 4 }
 0x140   : > { %v565_v34 = vrot.slane %v564_v32, 2  ;;  %v633_v35 = vadd.f32 %v632_v33, %v631_v28 }
 0x142   : > { %v566_v5 = vadd.f32 %v565_v34, %v564_v32  ;;  %v634_v36 = vrot.slane %v633_v35, 2 }
 0x144   : > { %v567_v20 = vrot.slane %v566_v5, 1  ;;  %v635_v37 = vadd.f32 %v634_v36, %v633_v35 }
 0x146   : > { %v636_v38 = vrot.slane %v635_v37, 1  ;;  %v568_v18 = vadd.f32 %v567_v20, %v566_v5 }
 0x148   : > { %v637_v26 = vadd.f32 %v636_v38, %v635_v37 }
 0x14a   : > { %v639_v30 = vsel %vm638_vm0, %v568_v18, %v637_v26 }
 0x14b   : > { %640 = vst [vmem:[%s177_s8] sm:$0x3] %v639_v30 }
 0x14c PF: > { %s12_s11 = sadd.s32 1, %s911_s11   ;;  %s1060_s9 = smov %s907_s10 }
 0x14d   : > { %p9_p5 = scmp.ge.s32.totalorder %s12_s11, 4   ;;  %s1061_s10 = smov %s1063_s12 }
 0x14f   :  { %11 = sbr.rel (!%p9_p5) target bundleno = 2 (0x2), region = 58 }

</bundles_post_ra>
